<compile_context>
chip_gen: v6e
topology: v6e:2x2x1
jax: 0.10.0
libtpu: 0.0.40
codegen_flags: <defaults>
</compile_context>

<pallas_src>
import jax
import jax.numpy as jnp
from jax import lax
from jax.experimental import pallas as pl
from jax.experimental.pallas import tpu as pltpu


# ---------------------------------------------------------------------------
# helpers
# ---------------------------------------------------------------------------
def _pick_tile(n, pref):
    """Largest tile <= pref that divides n (falls back to the full dim)."""
    if n <= pref:
        return n
    t = pref
    while t >= 8:
        if n % t == 0:
            return t
        t //= 2
    return n  # TODO(synk): pad + mask ragged dims for arbitrary production shapes.


# ---------------------------------------------------------------------------
# Linear kernel: o = x @ W + b   (fused QKV projection and out_proj)
#   * bf16 MXU inputs, f32 accumulation, bias added in f32, cast on store.
#   * Grid tiles both M and N so the weight block is (E_in, tn).
# ---------------------------------------------------------------------------
def _linear_kernel(x_ref, w_ref, b_ref, o_ref):
    x = x_ref[...].astype(jnp.bfloat16)
    acc = jnp.dot(x, w_ref[...], preferred_element_type=jnp.float32)
    o_ref[...] = (acc + b_ref[...]).astype(o_ref.dtype)


def _linear(x2d, w_bf16, b_f32, *, out_dtype, tm_pref=512, tn_pref=512):
    M, K = x2d.shape
    _, N = w_bf16.shape
    tm = _pick_tile(M, tm_pref)
    tn = _pick_tile(N, tn_pref)
    return pl.pallas_call(
        _linear_kernel,
        out_shape=jax.ShapeDtypeStruct((M, N), out_dtype),
        grid_spec=pltpu.PrefetchScalarGridSpec(
            num_scalar_prefetch=0,
            grid=(M // tm, N // tn),
            in_specs=[
                pl.BlockSpec((tm, K), lambda i, j: (i, 0)),
                pl.BlockSpec((K, tn), lambda i, j: (0, j)),
                pl.BlockSpec((1, tn), lambda i, j: (0, j)),
            ],
            out_specs=pl.BlockSpec((tm, tn), lambda i, j: (i, j)),
        ),
        compiler_params=pltpu.CompilerParams(
            dimension_semantics=("parallel", "parallel"),
            vmem_limit_bytes=48 * 1024 * 1024,
        ),
    )(x2d, w_bf16, b_f32)


# ---------------------------------------------------------------------------
# Attention kernel: all heads packed per grid step, full softmax row per step.
#   grid = (B, T // tq); q block (tq, H, D); K/V blocks (T, H, D) per batch.
#   Output is a lane-dense (tq, H*D) slab written straight into a (B, T, E) array.
# ---------------------------------------------------------------------------
def _make_attention_kernel(num_heads, has_mask, want_weights):
    def kernel(*refs):
        q_ref, k_ref, v_ref = refs[0], refs[1], refs[2]
        pos = 3
        mask_ref = None
        if has_mask:
            mask_ref = refs[pos]
            pos += 1
        o_ref = refs[pos]
        pos += 1
        w_ref = refs[pos] if want_weights else None

        # Load the (broadcastable) additive mask once per grid step.
        mask = mask_ref[...] if mask_ref is not None else None   # (1, T) or (tq, T) f32

        ctxs = []
        for h in range(num_heads):            # static unroll: heads packed per step
            q_h = q_ref[:, h, :]              # (tq, D) bf16 (scaling folded into q proj)
            k_h = k_ref[:, h, :]              # (T,  D) bf16
            v_h = v_ref[:, h, :]              # (T,  D) bf16
            # QK^T: contract the last axes directly (no explicit transpose of K).
            s = lax.dot_general(q_h, k_h, (((1,), (1,)), ((), ())),
                                preferred_element_type=jnp.float32)     # (tq, T)
            if mask is not None:
                s = s + mask
            s = s - jnp.max(s, axis=-1, keepdims=True)
            p = jnp.exp(s)
            p = p / jnp.sum(p, axis=-1, keepdims=True)   # exact divide (torch parity)
            if w_ref is not None:
                w_ref[h] = p.astype(w_ref.dtype)
            ctxs.append(jnp.dot(p.astype(v_h.dtype), v_h,
                                preferred_element_type=jnp.float32))     # (tq, D)

        ctx = ctxs[0] if num_heads == 1 else jnp.concatenate(ctxs, axis=-1)
        o_ref[...] = ctx.astype(o_ref.dtype)              # lane-dense (tq, H*D) store

    return kernel


def _attention(qkv, attention_mask, output_attentions, *, tq_pref=256):
    """qkv: (B, T, 3, H, D) bf16. Returns (ctx (B,T,H*D) bf16, weights (B,H,T,T) f32 | None)."""
    B, T, _, H, D = qkv.shape
    E = H * D
    tq = _pick_tile(T, tq_pref)
    grid = (B, T // tq)

    # q / k / v are picked out of the packed qkv tensor via the index_map (dim 2).
    q_spec = pl.BlockSpec((None, tq, None, H, D), lambda b, i: (b, i, 0, 0, 0))
    k_spec = pl.BlockSpec((None, T, None, H, D), lambda b, i: (b, 0, 1, 0, 0))
    v_spec = pl.BlockSpec((None, T, None, H, D), lambda b, i: (b, 0, 2, 0, 0))
    in_specs = [q_spec, k_spec, v_spec]
    args = [qkv, qkv, qkv]

    has_mask = attention_mask is not None
    if has_mask:
        mask = attention_mask.astype(jnp.float32)
        if mask.shape[2] == 1:   # broadcastable key-padding mask (B, 1, 1, T)
            mask_spec = pl.BlockSpec((None, None, 1, T), lambda b, i: (b, 0, 0, 0))
        else:                    # dense mask (B, 1, T, T)
            mask_spec = pl.BlockSpec((None, None, tq, T), lambda b, i: (b, 0, i, 0))
        in_specs.append(mask_spec)
        args.append(mask)

    ctx_spec = pl.BlockSpec((None, tq, E), lambda b, i: (b, i, 0))
    ctx_shape = jax.ShapeDtypeStruct((B, T, E), jnp.bfloat16)
    if output_attentions:
        out_specs = [ctx_spec,
                     pl.BlockSpec((None, H, tq, T), lambda b, i: (b, 0, i, 0))]
        out_shape = (ctx_shape, jax.ShapeDtypeStruct((B, H, T, T), jnp.float32))
    else:
        out_specs = ctx_spec
        out_shape = ctx_shape

    kernel = _make_attention_kernel(H, has_mask, output_attentions)
    out = pl.pallas_call(
        kernel,
        out_shape=out_shape,
        grid_spec=pltpu.PrefetchScalarGridSpec(
            num_scalar_prefetch=0,
            grid=grid,
            in_specs=in_specs,
            out_specs=out_specs,
        ),
        compiler_params=pltpu.CompilerParams(
            dimension_semantics=("parallel", "parallel"),
            vmem_limit_bytes=48 * 1024 * 1024,
        ),
    )(*args)

    if output_attentions:
        return out[0], out[1]
    return out, None


# ---------------------------------------------------------------------------
# Full forward pass (PegasusXAttention, self-attention, no cache, eval mode).
# ---------------------------------------------------------------------------
def pegasus_x_attention(hidden_states, params, num_heads,
                        attention_mask=None, output_attentions=False):
    """hidden_states: [B, T, E] f32.
    attention_mask: None, or additive mask of shape [B,1,1,T] or [B,1,T,T].
    params: torch-convention weights [E_out, E_in] and biases [E].
    Returns (attn_output [B,T,E], attn_weights [B,H,T,T] or None)."""
    B, T, E = hidden_states.shape
    H = num_heads
    D = E // H
    scaling = D ** (-0.5)

    # Host-side weight prep (done once per call; at load time in a real model):
    #   fold 1/sqrt(head_dim) into the q projection, fuse q/k/v, cast weights to bf16.
    wqkv = jnp.concatenate(
        [(params["wq"] * scaling).T, params["wk"].T, params["wv"].T],
        axis=1).astype(jnp.bfloat16)
    bqkv = jnp.concatenate(
        [params["bq"] * scaling, params["bk"], params["bv"]]
    ).reshape(1, 3 * E).astype(jnp.float32)
    wo = params["wo"].T.astype(jnp.bfloat16)
    bo = params["bo"].reshape(1, E).astype(jnp.float32)

    # Fused QKV projection: one (B*T, E) @ (E, 3E) MXU matmul, bf16 output.
    qkv = _linear(hidden_states.reshape(B * T, E), wqkv, bqkv,
                  out_dtype=jnp.bfloat16)                 # (B*T, 3E)

    # Pure reshape only -- NO transposes. Heads stay packed along the trailing dims and
    # are selected inside the attention kernel via BlockSpec indexing.
    qkv = qkv.reshape(B, T, 3, H, D)

    ctx, attn_weights = _attention(qkv, attention_mask, output_attentions)

    # ctx is already in torch's `transpose(1,2).reshape(B, T, -1)` layout: (B, T, H*D).
    attn_output = _linear(ctx.reshape(B * T, E), wo, bo,
                          out_dtype=hidden_states.dtype).reshape(B, T, E)
    return attn_output, attn_weights


# ---------------------------------------------------------------------------
# Pure-JAX f32 reference mirroring the PyTorch eager path.
# ---------------------------------------------------------------------------
def _reference(hidden_states, attention_mask, params, num_heads):
    B, T, E = hidden_states.shape
    D = E // num_heads
    scaling = D ** (-0.5)

    def linear(x, w, b):  # torch: x @ W.T + b
        return jnp.einsum("bte,oe->bto", x, w) + b

    q = linear(hidden_states, params["wq"], params["bq"])
    k = linear(hidden_states, params["wk"], params["bk"])
    v = linear(hidden_states, params["wv"], params["bv"])

    def split(x):  # [B,T,E] -> [B,H,T,D]
        return x.reshape(B, T, num_heads, D).transpose(0, 2, 1, 3)

    q, k, v = split(q), split(k), split(v)
    scores = jnp.einsum("bhtd,bhsd->bhts", q, k) * scaling
    if attention_mask is not None:
        scores = scores + attention_mask
    w = jax.nn.softmax(scores, axis=-1)
    ctx = jnp.einsum("bhts,bhsd->bhtd", w, v)
    ctx = ctx.transpose(0, 2, 1, 3).reshape(B, T, E)
    out = linear(ctx, params["wo"], params["bo"])
    return out, w


if __name__ == "__main__":
    # head_dim = 16, T = 256 (two q-tiles worth of rows if tq were 128; here one block).
    B, T, E, H = 2, 256, 64, 4

    key = jax.random.PRNGKey(0)
    keys = jax.random.split(key, 10)

    hidden_states = jax.random.normal(keys[0], (B, T, E), dtype=jnp.float32)

    scale = 0.05
    params = {
        "wq": scale * jax.random.normal(keys[1], (E, E), dtype=jnp.float32),
        "bq": scale * jax.random.normal(keys[2], (E,), dtype=jnp.float32),
        "wk": scale * jax.random.normal(keys[3], (E, E), dtype=jnp.float32),
        "bk": scale * jax.random.normal(keys[4], (E,), dtype=jnp.float32),
        "wv": scale * jax.random.normal(keys[5], (E, E), dtype=jnp.float32),
        "bv": scale * jax.random.normal(keys[6], (E,), dtype=jnp.float32),
        "wo": scale * jax.random.normal(keys[7], (E, E), dtype=jnp.float32),
        "bo": scale * jax.random.normal(keys[8], (E,), dtype=jnp.float32),
    }

    NEG = jnp.float32(-1e9)

    # 1) Broadcastable key-padding mask (B,1,1,T), hot path (no attn_weights).
    key_keep = jnp.ones((B, T), dtype=jnp.float32).at[1, T - 32:].set(0.0)
    pad_mask = (1.0 - key_keep)[:, None, None, :] * NEG
    out1, w1 = pegasus_x_attention(hidden_states, params, H,
                                   attention_mask=pad_mask, output_attentions=False)
    jax.block_until_ready(out1)
    ref1, _ = _reference(hidden_states, pad_mask, params, H)
    assert w1 is None
    # Tolerances account for bf16 MXU inputs (f32 accumulation).
    assert jnp.allclose(out1, ref1, atol=1e-2, rtol=2e-2), "padmask output mismatch"

    # 2) Dense causal mask (B,1,T,T), output_attentions=True (checks attn_weights too).
    causal = jnp.where(jnp.tril(jnp.ones((T, T), dtype=bool)),
                       jnp.float32(0.0), NEG)
    causal_mask = jnp.broadcast_to(causal, (B, 1, T, T))
    out2, w2 = pegasus_x_attention(hidden_states, params, H,
                                   attention_mask=causal_mask, output_attentions=True)
    jax.block_until_ready(out2)
    jax.block_until_ready(w2)
    ref2, refw2 = _reference(hidden_states, causal_mask, params, H)
    assert w2.shape == (B, H, T, T)
    assert jnp.allclose(out2, ref2, atol=1e-2, rtol=2e-2), "causal output mismatch"
    assert jnp.allclose(w2, refw2, atol=2e-3, rtol=2e-2), "attn_weights mismatch"

    # 3) No mask (attention_mask=None), hot path.
    out3, _ = pegasus_x_attention(hidden_states, params, H,
                                  attention_mask=None, output_attentions=False)
    jax.block_until_ready(out3)
    ref3, _ = _reference(hidden_states, None, params, H)
    assert jnp.allclose(out3, ref3, atol=1e-2, rtol=2e-2), "nomask output mismatch"

    print("KERNEL_OK")
</pallas_src>

<mosaic_0001>
module attributes {stable_mosaic.version = 11 : i64} {
  func.func @_linear_kernel(%arg0: i32, %arg1: i32, %arg2: memref<512x64xf32, #tpu.memory_space<vmem>>, %arg3: memref<64x192xbf16, #tpu.memory_space<vmem>>, %arg4: memref<1x192xf32, #tpu.memory_space<vmem>>, %arg5: memref<512x192xbf16, #tpu.memory_space<vmem>>) attributes {dimension_semantics = [#tpu.dimension_semantics<parallel>, #tpu.dimension_semantics<parallel>], iteration_bounds = array<i64: 1, 1>, scalar_prefetch = 0 : i64, scratch_operands = 0 : i64, tpu.core_type = #tpu.core_type<tc>, window_params = [{transform_indices = @transform_0, window_bounds = array<i64: 512, 64>}, {transform_indices = @transform_1, window_bounds = array<i64: 64, 192>}, {transform_indices = @transform_2, window_bounds = array<i64: 1, 192>}, {transform_indices = @transform_3, window_bounds = array<i64: 512, 192>}]} {
    %c0 = arith.constant 0 : index
    %c0_0 = arith.constant 0 : index
    %0 = vector.load %arg2[%c0, %c0_0] : memref<512x64xf32, #tpu.memory_space<vmem>>, vector<512x64xf32>
    %1 = arith.truncf %0 : vector<512x64xf32> to vector<512x64xbf16>
    %c0_1 = arith.constant 0 : index
    %c0_2 = arith.constant 0 : index
    %2 = vector.load %arg3[%c0_1, %c0_2] : memref<64x192xbf16, #tpu.memory_space<vmem>>, vector<64x192xbf16>
    %cst = arith.constant dense<0.000000e+00> : vector<512x192xf32>
    %3 = tpu.matmul %1, %2, %cst {dimension_numbers = #tpu.dot_dimension_numbers<[1], [0], [0], [1], [0, 0, 1, 1], [], []>} : vector<512x64xbf16>, vector<64x192xbf16>, vector<512x192xf32> -> vector<512x192xf32>
    %c0_3 = arith.constant 0 : index
    %c0_4 = arith.constant 0 : index
    %4 = vector.load %arg4[%c0_3, %c0_4] : memref<1x192xf32, #tpu.memory_space<vmem>>, vector<1x192xf32>
    %5 = vector.broadcast %4 : vector<1x192xf32> to vector<512x192xf32>
    %6 = arith.addf %3, %5 : vector<512x192xf32>
    %7 = arith.truncf %6 : vector<512x192xf32> to vector<512x192xbf16>
    %c0_5 = arith.constant 0 : index
    %c0_6 = arith.constant 0 : index
    %8 = vector.load %arg5[%c0_5, %c0_6] : memref<512x192xbf16, #tpu.memory_space<vmem>>, vector<512x192xbf16>
    tpu.vector_store %arg5[%c0_5, %c0_6], %7 {strides = array<i32>} : memref<512x192xbf16, #tpu.memory_space<vmem>>, vector<512x192xbf16>,
    return
  }
  func.func @transform_0(%arg0: i32, %arg1: i32) -> (i32, i32) {
    %c0_i32 = arith.constant 0 : i32
    %c0_i32_0 = arith.constant 0 : i32
    return %arg0, %c0_i32 : i32, i32
  }
  func.func @transform_1(%arg0: i32, %arg1: i32) -> (i32, i32) {
    %c0_i32 = arith.constant 0 : i32
    %c0_i32_0 = arith.constant 0 : i32
    return %c0_i32, %arg1 : i32, i32
  }
  func.func @transform_2(%arg0: i32, %arg1: i32) -> (i32, i32) {
    %c0_i32 = arith.constant 0 : i32
    %c0_i32_0 = arith.constant 0 : i32
    return %c0_i32, %arg1 : i32, i32
  }
  func.func @transform_3(%arg0: i32, %arg1: i32) -> (i32, i32) {
    %c0_i32 = arith.constant 0 : i32
    return %arg0, %arg1 : i32, i32
  }
}

</mosaic_0001>

<bundles_post_ra>
// kernel: tpu_custom_call.1
= control target key start
LH: loop header
LB: loop body
LE: loop exit
PB: predicated region body
PF: predicated region fallthrough
CT: control target
= control target key end

     0   :  { %v1265_v1 = vmov 0   ;;  %vm171_vm0 = vcmask 523264   ;;  %vm1005_vm1 = vcmask 1043456   ;;  %vm1006_vm2 = vcmask 523268   ;;  %s2025_s1 = inlined_call_operand.vmem [shape: bf16[64,192], index: 1, kind: input, shape index: {}]   ;;  %s2026_s0 = inlined_call_operand.vmem [shape: f32[512,64], index: 0, kind: input, shape index: {}]   ;;  %s2027_s2 = inlined_call_operand.vmem [shape: f32[1,192], index: 2, kind: input, shape index: {}]   ;;  %s2028_s3 = inlined_call_operand.vmem [shape: bf16[512,192], index: 3, kind: output, shape index: {}]  }
   0x1   :  { %v1253_v0 = vld [vmem:[%s2025_s1 + $0x34] ss:$8 sps:$4 sm:$0xff]   ;;  %300 = vmatprep.mubr.bf16.mxu0 %v1265_v1  ;;  %460 = vmatprep.mubr.bf16.mxu1 %v1265_v1  ;;  %v1255_v2 = vld [vmem:[%s2025_s1 + $0x30] ss:$8 sps:$4 sm:$0xff]   ;;  %v1256_v3 = vld [vmem:[%s2025_s1 + $0x24] ss:$8 sps:$4 sm:$0xff]  }
   0x2   :  { %276 = vmatprep.subr.bf16.mxu0 %v1253_v0  ;;  %1244 = vmatprep.subr.bf16.mxu1 %v1253_v0  ;;  %v1258_v4 = vld [vmem:[%s2025_s1 + $0x20] ss:$8 sps:$4 sm:$0xff]   ;;  %v1259_v5 = vld [vmem:[%s2025_s1 + $0x14] ss:$8 sps:$4 sm:$0xff]   ;;  %v1261_v6 = vld [vmem:[%s2025_s1 + $0x10] ss:$8 sps:$4 sm:$0xff]  }
   0x3   :  { %277 = vmatpush1.bf16.msra.mxu0 %v1255_v2  ;;  %1248 = vmatpush1.bf16.msra.mxu1 %v1255_v2  ;;  %v1262_v7 = vld [vmem:[%s2025_s1 + $0x4] ss:$8 sps:$4 sm:$0xff]   ;;  %v1264_v8 = vld [vmem:[%s2025_s1] ss:$8 sps:$4 sm:$0xff]   ;;  %v17_v15 = vld [vmem:[%s2026_s0 + $0x10] sm:$0xff] }
   0x4   :  { %278 = vmatprep.subr.bf16.mxu0 %v1256_v3  ;;  %1245 = vmatprep.subr.bf16.mxu1 %v1256_v3  ;;  %v15_v9 = vld [vmem:[%s2026_s0] sm:$0xff]  ;;  %v16_v10 = vld [vmem:[%s2026_s0 + $0x8] sm:$0xff]  ;;  %v18_v16 = vld [vmem:[%s2026_s0 + $0x18] sm:$0xff] }
   0x5   :  { %v47_v11 = vld [vmem:[%s2026_s0 + $0x100] sm:$0xff]  ;;  %v48_v12 = vld [vmem:[%s2026_s0 + $0x108] sm:$0xff]  ;;  %v79_v13 = vpack.c.bf16 %v16_v10, %v15_v9  ;;  %v49_v17 = vld [vmem:[%s2026_s0 + $0x110] sm:$0xff]  ;;  %v80_v19 = vpack.c.bf16 %v18_v16, %v17_v15 }
   0x6   :  { %v95_v14 = vpack.c.bf16 %v48_v12, %v47_v11  ;;  %v50_v18 = vld [vmem:[%s2026_s0 + $0x118] sm:$0xff]  ;;  %v19_v21 = vld [vmem:[%s2026_s0 + $0x20] sm:$0xff]  ;;  %v20_v22 = vld [vmem:[%s2026_s0 + $0x28] sm:$0xff] }
   0x7   :  { %279 = vmatpush1.bf16.msra.mxu0 %v1258_v4  ;;  %1249 = vmatpush1.bf16.msra.mxu1 %v1258_v4  ;;  %v96_v20 = vpack.c.bf16 %v50_v18, %v49_v17  ;;  %v51_v23 = vld [vmem:[%s2026_s0 + $0x120] sm:$0xff]  ;;  %v52_v24 = vld [vmem:[%s2026_s0 + $0x128] sm:$0xff]  ;;  %v81_v25 = vpack.c.bf16 %v20_v22, %v19_v21  ;;  %v21_v27 = vld [vmem:[%s2026_s0 + $0x30] sm:$0xff] }
   0x8   :  { %280 = vmatprep.subr.bf16.mxu0 %v1259_v5  ;;  %1246 = vmatprep.subr.bf16.mxu1 %v1259_v5  ;;  %v97_v26 = vpack.c.bf16 %v52_v24, %v51_v23  ;;  %v22_v28 = vld [vmem:[%s2026_s0 + $0x38] sm:$0xff]  ;;  %v53_v29 = vld [vmem:[%s2026_s0 + $0x130] sm:$0xff]  ;;  %v23_v33 = vld [vmem:[%s2026_s0 + $0x40] sm:$0xff] }
   0x9   :  { %v54_v30 = vld [vmem:[%s2026_s0 + $0x138] sm:$0xff]  ;;  %v82_v31 = vpack.c.bf16 %v22_v28, %v21_v27  ;;  %v24_v34 = vld [vmem:[%s2026_s0 + $0x48] sm:$0xff]  ;;  %v55_v35 = vld [vmem:[%s2026_s0 + $0x140] sm:$0xff] }
   0xa   :  { %v98_v32 = vpack.c.bf16 %v54_v30, %v53_v29  ;;  %v56_v36 = vld [vmem:[%s2026_s0 + $0x148] sm:$0xff]  ;;  %v83_v37 = vpack.c.bf16 %v24_v34, %v23_v33  ;;  %v25_v39 = vld [vmem:[%s2026_s0 + $0x50] sm:$0xff]  ;;  %v26_v40 = vld [vmem:[%s2026_s0 + $0x58] sm:$0xff] }
   0xb   :  { %281 = vmatpush1.bf16.msra.mxu0 %v1261_v6  ;;  %1250 = vmatpush1.bf16.msra.mxu1 %v1261_v6  ;;  %v99_v38 = vpack.c.bf16 %v56_v36, %v55_v35  ;;  %v57_v41 = vld [vmem:[%s2026_s0 + $0x150] sm:$0xff]  ;;  %v58_v42 = vld [vmem:[%s2026_s0 + $0x158] sm:$0xff]  ;;  %v84_v43 = vpack.c.bf16 %v26_v40, %v25_v39  ;;  %v27_v45 = vld [vmem:[%s2026_s0 + $0x60] sm:$0xff] }
   0xc   :  { %282 = vmatprep.subr.bf16.mxu0 %v1262_v7  ;;  %1247 = vmatprep.subr.bf16.mxu1 %v1262_v7  ;;  %v100_v44 = vpack.c.bf16 %v58_v42, %v57_v41  ;;  %v28_v46 = vld [vmem:[%s2026_s0 + $0x68] sm:$0xff]  ;;  %v59_v47 = vld [vmem:[%s2026_s0 + $0x160] sm:$0xff]  ;;  %v29_v51 = vld [vmem:[%s2026_s0 + $0x70] sm:$0xff]  ;;  %v121_v42 = vlaneseq }
   0xd   :  { %v60_v48 = vld [vmem:[%s2026_s0 + $0x168] sm:$0xff]  ;;  %v85_v49 = vpack.c.bf16 %v28_v46, %v27_v45  ;;  %v30_v52 = vld [vmem:[%s2026_s0 + $0x78] sm:$0xff]  ;;  %v61_v53 = vld [vmem:[%s2026_s0 + $0x170] sm:$0xff] }
   0xe   :  { %v101_v50 = vpack.c.bf16 %v60_v48, %v59_v47  ;;  %v62_v54 = vld [vmem:[%s2026_s0 + $0x178] sm:$0xff]  ;;  %v86_v55 = vpack.c.bf16 %v30_v52, %v29_v51  ;;  %v31_v57 = vld [vmem:[%s2026_s0 + $0x80] sm:$0xff]  ;;  %v32_v58 = vld [vmem:[%s2026_s0 + $0x88] sm:$0xff] }
   0xf   :  { %283 = vmatpush1.bf16.msra.mxu0 %v1264_v8  ;;  %1251 = vmatpush1.bf16.msra.mxu1 %v1264_v8  ;;  %v102_v56 = vpack.c.bf16 %v62_v54, %v61_v53  ;;  %v63_v59 = vld [vmem:[%s2026_s0 + $0x180] sm:$0xff]  ;;  %v64_v60 = vld [vmem:[%s2026_s0 + $0x188] sm:$0xff]  ;;  %v87_v61 = vpack.c.bf16 %v32_v58, %v31_v57  ;;  %v33_v63 = vld [vmem:[%s2026_s0 + $0x90] sm:$0xff] }
  0x10   :  { %v103_v62 = vpack.c.bf16 %v64_v60, %v63_v59  ;;  %v34_v0 = vld [vmem:[%s2026_s0 + $0x98] sm:$0xff]  ;;  %v65_v2 = vld [vmem:[%s2026_s0 + $0x190] sm:$0xff]  ;;  %v35_v6 = vld [vmem:[%s2026_s0 + $0xa0] sm:$0xff] }
  0x11   :  { %v66_v3 = vld [vmem:[%s2026_s0 + $0x198] sm:$0xff]  ;;  %v88_v4 = vpack.c.bf16 %v34_v0, %v33_v63  ;;  %v36_v7 = vld [vmem:[%s2026_s0 + $0xa8] sm:$0xff]  ;;  %v67_v8 = vld [vmem:[%s2026_s0 + $0x1a0] sm:$0xff] }
  0x12   :  { %1084 = vmatmul.mubr.msk.bf16.vlgmr.msra.gmra.mxu0 %vm171_vm0, %v79_v13  ;;  %1100 = vmatmul.mubr.msk.bf16.vlgmr.msra.gmra.mxu1 %vm171_vm0, %v95_v14  ;;  %v104_v5 = vpack.c.bf16 %v66_v3, %v65_v2  ;;  %v68_v9 = vld [vmem:[%s2026_s0 + $0x1a8] sm:$0xff]  ;;  %v89_v10 = vpack.c.bf16 %v36_v7, %v35_v6  ;;  %v37_v12 = vld [vmem:[%s2026_s0 + $0xb0] sm:$0xff]  ;;  %v38_v13 = vld [vmem:[%s2026_s0 + $0xb8] sm:$0xff] }
  0x13   :  { %310 = vmatprep.mubr.bf16.mxu0 %v1265_v1  ;;  %470 = vmatprep.mubr.bf16.mxu1 %v1265_v1  ;;  %v105_v11 = vpack.c.bf16 %v68_v9, %v67_v8  ;;  %v69_v14 = vld [vmem:[%s2026_s0 + $0x1b0] sm:$0xff]  ;;  %v70_v15 = vld [vmem:[%s2026_s0 + $0x1b8] sm:$0xff]  ;;  %v90_v16 = vpack.c.bf16 %v38_v13, %v37_v12  ;;  %v39_v18 = vld [vmem:[%s2026_s0 + $0xc0] sm:$0xff] }
  0x14   :  { %v106_v17 = vpack.c.bf16 %v70_v15, %v69_v14  ;;  %v72_v21 = vld [vmem:[%s2026_s0 + $0x1c8] sm:$0xff]  ;;  %v41_v24 = vld [vmem:[%s2026_s0 + $0xd0] sm:$0xff]  ;;  %v74_v27 = vld [vmem:[%s2026_s0 + $0x1d8] sm:$0xff] }
  0x15   :  { %v43_v30 = vld [vmem:[%s2026_s0 + $0xe0] sm:$0xff]  ;;  %v76_v33 = vld [vmem:[%s2026_s0 + $0x1e8] sm:$0xff]  ;;  %v45_v36 = vld [vmem:[%s2026_s0 + $0xf0] sm:$0xff] }
  0x16   :  { %v78_v39 = vld [vmem:[%s2026_s0 + $0x1f8] sm:$0xff]  ;;  %v119_v45 = vld [vmem:[%s2027_s2] sm:$0x3]  ;;  %vm1577_vm3 = vmor %vm1006_vm2, %vm1005_vm1 }
  0x1a   :  { %1085 = vmatmul.mubr.msk.bf16.gmra.mxu0 %vm171_vm0, %v80_v19  ;;  %1101 = vmatmul.mubr.msk.bf16.gmra.mxu1 %vm171_vm0, %v96_v20  ;;  %v40_v19 = vld [vmem:[%s2026_s0 + $0xc8] sm:$0xff]  ;;  %v71_v20 = vld [vmem:[%s2026_s0 + $0x1c0] sm:$0xff] }
  0x1b   :  { %320 = vmatprep.mubr.bf16.mxu0 %v1265_v1  ;;  %480 = vmatprep.mubr.bf16.mxu1 %v1265_v1  ;;  %v91_v22 = vpack.c.bf16 %v40_v19, %v39_v18  ;;  %v107_v23 = vpack.c.bf16 %v72_v21, %v71_v20 }
  0x22   :  { %1086 = vmatmul.mubr.msk.bf16.gmra.mxu0 %vm171_vm0, %v81_v25  ;;  %1102 = vmatmul.mubr.msk.bf16.gmra.mxu1 %vm171_vm0, %v97_v26  ;;  %v42_v25 = vld [vmem:[%s2026_s0 + $0xd8] sm:$0xff]  ;;  %v73_v26 = vld [vmem:[%s2026_s0 + $0x1d0] sm:$0xff] }
  0x23   :  { %330 = vmatprep.mubr.bf16.mxu0 %v1265_v1  ;;  %490 = vmatprep.mubr.bf16.mxu1 %v1265_v1  ;;  %v92_v28 = vpack.c.bf16 %v42_v25, %v41_v24  ;;  %v108_v29 = vpack.c.bf16 %v74_v27, %v73_v26 }
  0x2a   :  { %1087 = vmatmul.mubr.msk.bf16.gmra.mxu0 %vm171_vm0, %v82_v31  ;;  %1103 = vmatmul.mubr.msk.bf16.gmra.mxu1 %vm171_vm0, %v98_v32  ;;  %v44_v31 = vld [vmem:[%s2026_s0 + $0xe8] sm:$0xff]  ;;  %v75_v32 = vld [vmem:[%s2026_s0 + $0x1e0] sm:$0xff] }
  0x2b   :  { %340 = vmatprep.mubr.bf16.mxu0 %v1265_v1  ;;  %500 = vmatprep.mubr.bf16.mxu1 %v1265_v1  ;;  %v93_v34 = vpack.c.bf16 %v44_v31, %v43_v30  ;;  %v109_v35 = vpack.c.bf16 %v76_v33, %v75_v32 }
  0x32   :  { %1088 = vmatmul.mubr.msk.bf16.gmra.mxu0 %vm171_vm0, %v83_v37  ;;  %1104 = vmatmul.mubr.msk.bf16.gmra.mxu1 %vm171_vm0, %v99_v38  ;;  %v46_v37 = vld [vmem:[%s2026_s0 + $0xf8] sm:$0xff]  ;;  %v77_v38 = vld [vmem:[%s2026_s0 + $0x1f0] sm:$0xff] }
  0x33   :  { %350 = vmatprep.mubr.bf16.mxu0 %v1265_v1  ;;  %510 = vmatprep.mubr.bf16.mxu1 %v1265_v1  ;;  %v94_v40 = vpack.c.bf16 %v46_v37, %v45_v36  ;;  %v110_v41 = vpack.c.bf16 %v78_v39, %v77_v38 }
  0x3a   :  { %1089 = vmatmul.mubr.msk.bf16.gmra.mxu0 %vm171_vm0, %v84_v43  ;;  %1105 = vmatmul.mubr.msk.bf16.gmra.mxu1 %vm171_vm0, %v100_v44 }
  0x3b   :  { %360 = vmatprep.mubr.bf16.mxu0 %v1265_v1  ;;  %520 = vmatprep.mubr.bf16.mxu1 %v1265_v1 }
  0x42   :  { %1090 = vmatmul.mubr.msk.bf16.gmra.mxu0 %vm171_vm0, %v85_v49  ;;  %1106 = vmatmul.mubr.msk.bf16.gmra.mxu1 %vm171_vm0, %v101_v50 }
  0x43   :  { %370 = vmatprep.mubr.bf16.mxu0 %v1265_v1  ;;  %530 = vmatprep.mubr.bf16.mxu1 %v1265_v1 }
  0x4a   :  { %1091 = vmatmul.mubr.msk.bf16.gmra.mxu0 %vm171_vm0, %v86_v55  ;;  %1107 = vmatmul.mubr.msk.bf16.gmra.mxu1 %vm171_vm0, %v102_v56 }
  0x4b   :  { %380 = vmatprep.mubr.bf16.mxu0 %v1265_v1  ;;  %540 = vmatprep.mubr.bf16.mxu1 %v1265_v1 }
  0x52   :  { %1092 = vmatmul.mubr.msk.bf16.gmra.mxu0 %vm171_vm0, %v87_v61  ;;  %1108 = vmatmul.mubr.msk.bf16.gmra.mxu1 %vm171_vm0, %v103_v62 }
  0x53   :  { %390 = vmatprep.mubr.bf16.mxu0 %v1265_v1  ;;  %550 = vmatprep.mubr.bf16.mxu1 %v1265_v1 }
  0x5a   :  { %1093 = vmatmul.mubr.msk.bf16.gmra.mxu0 %vm171_vm0, %v88_v4  ;;  %1109 = vmatmul.mubr.msk.bf16.gmra.mxu1 %vm171_vm0, %v104_v5 }
  0x5b   :  { %400 = vmatprep.mubr.bf16.mxu0 %v1265_v1  ;;  %560 = vmatprep.mubr.bf16.mxu1 %v1265_v1 }
  0x62   :  { %1094 = vmatmul.mubr.msk.bf16.gmra.mxu0 %vm171_vm0, %v89_v10  ;;  %1110 = vmatmul.mubr.msk.bf16.gmra.mxu1 %vm171_vm0, %v105_v11 }
  0x63   :  { %410 = vmatprep.mubr.bf16.mxu0 %v1265_v1  ;;  %570 = vmatprep.mubr.bf16.mxu1 %v1265_v1 }
  0x6a   :  { %1095 = vmatmul.mubr.msk.bf16.gmra.mxu0 %vm171_vm0, %v90_v16  ;;  %1111 = vmatmul.mubr.msk.bf16.gmra.mxu1 %vm171_vm0, %v106_v17 }
  0x6b   :  { %420 = vmatprep.mubr.bf16.mxu0 %v1265_v1  ;;  %580 = vmatprep.mubr.bf16.mxu1 %v1265_v1 }
  0x72   :  { %1096 = vmatmul.mubr.msk.bf16.gmra.mxu0 %vm171_vm0, %v91_v22  ;;  %1112 = vmatmul.mubr.msk.bf16.gmra.mxu1 %vm171_vm0, %v107_v23 }
  0x73   :  { %430 = vmatprep.mubr.bf16.mxu0 %v1265_v1  ;;  %590 = vmatprep.mubr.bf16.mxu1 %v1265_v1 }
  0x7a   :  { %1097 = vmatmul.mubr.msk.bf16.gmra.mxu0 %vm171_vm0, %v92_v28  ;;  %1113 = vmatmul.mubr.msk.bf16.gmra.mxu1 %vm171_vm0, %v108_v29 }
  0x7b   :  { %440 = vmatprep.mubr.bf16.mxu0 %v1265_v1  ;;  %600 = vmatprep.mubr.bf16.mxu1 %v1265_v1 }
  0x82   :  { %1098 = vmatmul.mubr.msk.bf16.gmra.mxu0 %vm171_vm0, %v93_v34  ;;  %1114 = vmatmul.mubr.msk.bf16.gmra.mxu1 %vm171_vm0, %v109_v35 }
  0x83   :  { %450 = vmatprep.mubr.bf16.mxu0 %v1265_v1  ;;  %610 = vmatprep.mubr.bf16.mxu1 %v1265_v1  ;;  %v122_v1 = vshrl.u32 %v121_v42, 7 }
  0x85   :  { %v123_v43 = vsub.s32 0, %v122_v1  ;;  %v127_v44 = vsub.s32 1, %v122_v1 }
  0x87   :  { %v1569_v46 = vrot.slane %v119_v45, %v123_v43  ;;  %v1571_v47 = vrot.slane %v119_v45, %v127_v44 }
  0x8a   :  { %1099 = vmatmul.mubr.msk.bf16.gmra.mxu0 %vm171_vm0, %v94_v40  ;;  %1115 = vmatmul.mubr.msk.bf16.gmra.mxu1 %vm171_vm0, %v110_v41 }
  0xd2   :  { %v302_v48 = vpop.f32.mrf.mxu0  ;;  %v462_v49 = vpop.f32.mrf.mxu1 }
  0xd3   :  { %v303_v52 = vadd.f32 %v302_v48, %v1569_v46  ;;  %v463_v53 = vadd.f32 %v462_v49, %v1569_v46 }
  0xd4   :  { %v304_v50 = vpop.f32.mrf.mxu0  ;;  %v464_v51 = vpop.f32.mrf.mxu1 }
  0xd5   :  { %v305_v54 = vadd.f32 %v304_v50, %v1571_v47  ;;  %v465_v55 = vadd.f32 %v464_v51, %v1571_v47 }
  0xd6   :  { %v306_v57 = vpop.f32.mrf.mxu0  ;;  %v466_v58 = vpop.f32.mrf.mxu1 }
  0xd7   :  { %v1180_v59 = vpack.c.bf16 %v305_v54, %v303_v52  ;;  %v1212_v60 = vpack.c.bf16 %v465_v55, %v463_v53  ;;  %v307_v63 = vadd.f32 %v306_v57, %v1569_v46  ;;  %v467_v0 = vadd.f32 %v466_v58, %v1569_v46 }
  0xd8   :  { %v308_v61 = vpop.f32.mrf.mxu0  ;;  %v468_v62 = vpop.f32.mrf.mxu1 }
  0xd9   :  { %1008 = vst.msk [vmem:[%s2028_s3] sm:$0xff] %vm1577_vm3, %v1180_v59  ;;  %1040 = vst.msk [vmem:[%s2028_s3 + $0x100] sm:$0xff] %vm1577_vm3, %v1212_v60  ;;  %v309_v2 = vadd.f32 %v308_v61, %v1571_v47  ;;  %v469_v3 = vadd.f32 %v468_v62, %v1571_v47 }
  0xda   :  { %v312_v4 = vpop.f32.mrf.mxu0  ;;  %v472_v5 = vpop.f32.mrf.mxu1 }
  0xdb   :  { %v1181_v6 = vpack.c.bf16 %v309_v2, %v307_v63  ;;  %v1213_v7 = vpack.c.bf16 %v469_v3, %v467_v0  ;;  %v313_v10 = vadd.f32 %v312_v4, %v1569_v46  ;;  %v473_v11 = vadd.f32 %v472_v5, %v1569_v46 }
  0xdc   :  { %v314_v8 = vpop.f32.mrf.mxu0  ;;  %v474_v9 = vpop.f32.mrf.mxu1 }
  0xdd   :  { %1009 = vst.msk [vmem:[%s2028_s3 + $0x8] sm:$0xff] %vm1577_vm3, %v1181_v6  ;;  %1041 = vst.msk [vmem:[%s2028_s3 + $0x108] sm:$0xff] %vm1577_vm3, %v1213_v7  ;;  %v315_v12 = vadd.f32 %v314_v8, %v1571_v47  ;;  %v475_v13 = vadd.f32 %v474_v9, %v1571_v47 }
  0xde   :  { %v316_v14 = vpop.f32.mrf.mxu0  ;;  %v476_v15 = vpop.f32.mrf.mxu1 }
  0xdf   :  { %v1182_v16 = vpack.c.bf16 %v315_v12, %v313_v10  ;;  %v1214_v17 = vpack.c.bf16 %v475_v13, %v473_v11  ;;  %v317_v20 = vadd.f32 %v316_v14, %v1569_v46  ;;  %v477_v21 = vadd.f32 %v476_v15, %v1569_v46 }
  0xe0   :  { %v318_v18 = vpop.f32.mrf.mxu0  ;;  %v478_v19 = vpop.f32.mrf.mxu1 }
  0xe1   :  { %1010 = vst.msk [vmem:[%s2028_s3 + $0x10] sm:$0xff] %vm1577_vm3, %v1182_v16  ;;  %1042 = vst.msk [vmem:[%s2028_s3 + $0x110] sm:$0xff] %vm1577_vm3, %v1214_v17  ;;  %v319_v22 = vadd.f32 %v318_v18, %v1571_v47  ;;  %v479_v23 = vadd.f32 %v478_v19, %v1571_v47 }
  0xe2   :  { %v322_v24 = vpop.f32.mrf.mxu0  ;;  %v482_v25 = vpop.f32.mrf.mxu1 }
  0xe3   :  { %v1183_v26 = vpack.c.bf16 %v319_v22, %v317_v20  ;;  %v1215_v27 = vpack.c.bf16 %v479_v23, %v477_v21  ;;  %v323_v30 = vadd.f32 %v322_v24, %v1569_v46  ;;  %v483_v31 = vadd.f32 %v482_v25, %v1569_v46 }
  0xe4   :  { %v324_v28 = vpop.f32.mrf.mxu0  ;;  %v484_v29 = vpop.f32.mrf.mxu1 }
  0xe5   :  { %1011 = vst.msk [vmem:[%s2028_s3 + $0x18] sm:$0xff] %vm1577_vm3, %v1183_v26  ;;  %1043 = vst.msk [vmem:[%s2028_s3 + $0x118] sm:$0xff] %vm1577_vm3, %v1215_v27  ;;  %v325_v32 = vadd.f32 %v324_v28, %v1571_v47  ;;  %v485_v33 = vadd.f32 %v484_v29, %v1571_v47 }
  0xe6   :  { %v326_v34 = vpop.f32.mrf.mxu0  ;;  %v486_v35 = vpop.f32.mrf.mxu1 }
  0xe7   :  { %v1184_v36 = vpack.c.bf16 %v325_v32, %v323_v30  ;;  %v1216_v37 = vpack.c.bf16 %v485_v33, %v483_v31  ;;  %v327_v40 = vadd.f32 %v326_v34, %v1569_v46  ;;  %v487_v41 = vadd.f32 %v486_v35, %v1569_v46 }
  0xe8   :  { %v328_v38 = vpop.f32.mrf.mxu0  ;;  %v488_v39 = vpop.f32.mrf.mxu1 }
  0xe9   :  { %1012 = vst.msk [vmem:[%s2028_s3 + $0x20] sm:$0xff] %vm1577_vm3, %v1184_v36  ;;  %1044 = vst.msk [vmem:[%s2028_s3 + $0x120] sm:$0xff] %vm1577_vm3, %v1216_v37  ;;  %v329_v42 = vadd.f32 %v328_v38, %v1571_v47  ;;  %v489_v1 = vadd.f32 %v488_v39, %v1571_v47 }
  0xea   :  { %v332_v43 = vpop.f32.mrf.mxu0  ;;  %v492_v44 = vpop.f32.mrf.mxu1 }
  0xeb   :  { %v1185_v45 = vpack.c.bf16 %v329_v42, %v327_v40  ;;  %v1217_v48 = vpack.c.bf16 %v489_v1, %v487_v41  ;;  %v333_v51 = vadd.f32 %v332_v43, %v1569_v46  ;;  %v493_v52 = vadd.f32 %v492_v44, %v1569_v46 }
  0xec   :  { %v334_v49 = vpop.f32.mrf.mxu0  ;;  %v494_v50 = vpop.f32.mrf.mxu1 }
  0xed   :  { %1013 = vst.msk [vmem:[%s2028_s3 + $0x28] sm:$0xff] %vm1577_vm3, %v1185_v45  ;;  %1045 = vst.msk [vmem:[%s2028_s3 + $0x128] sm:$0xff] %vm1577_vm3, %v1217_v48  ;;  %v335_v53 = vadd.f32 %v334_v49, %v1571_v47  ;;  %v495_v54 = vadd.f32 %v494_v50, %v1571_v47 }
  0xee   :  { %v336_v55 = vpop.f32.mrf.mxu0  ;;  %v496_v57 = vpop.f32.mrf.mxu1 }
  0xef   :  { %v1186_v58 = vpack.c.bf16 %v335_v53, %v333_v51  ;;  %v1218_v59 = vpack.c.bf16 %v495_v54, %v493_v52  ;;  %v337_v62 = vadd.f32 %v336_v55, %v1569_v46  ;;  %v497_v63 = vadd.f32 %v496_v57, %v1569_v46 }
  0xf0   :  { %v338_v60 = vpop.f32.mrf.mxu0  ;;  %v498_v61 = vpop.f32.mrf.mxu1 }
  0xf1   :  { %1014 = vst.msk [vmem:[%s2028_s3 + $0x30] sm:$0xff] %vm1577_vm3, %v1186_v58  ;;  %1046 = vst.msk [vmem:[%s2028_s3 + $0x130] sm:$0xff] %vm1577_vm3, %v1218_v59  ;;  %v339_v0 = vadd.f32 %v338_v60, %v1571_v47  ;;  %v499_v2 = vadd.f32 %v498_v61, %v1571_v47 }
  0xf2   :  { %v342_v3 = vpop.f32.mrf.mxu0  ;;  %v502_v4 = vpop.f32.mrf.mxu1 }
  0xf3   :  { %v1187_v5 = vpack.c.bf16 %v339_v0, %v337_v62  ;;  %v1219_v6 = vpack.c.bf16 %v499_v2, %v497_v63  ;;  %v343_v9 = vadd.f32 %v342_v3, %v1569_v46  ;;  %v503_v10 = vadd.f32 %v502_v4, %v1569_v46 }
  0xf4   :  { %v344_v7 = vpop.f32.mrf.mxu0  ;;  %v504_v8 = vpop.f32.mrf.mxu1 }
  0xf5   :  { %1015 = vst.msk [vmem:[%s2028_s3 + $0x38] sm:$0xff] %vm1577_vm3, %v1187_v5  ;;  %1047 = vst.msk [vmem:[%s2028_s3 + $0x138] sm:$0xff] %vm1577_vm3, %v1219_v6  ;;  %v345_v11 = vadd.f32 %v344_v7, %v1571_v47  ;;  %v505_v12 = vadd.f32 %v504_v8, %v1571_v47 }
  0xf6   :  { %v346_v13 = vpop.f32.mrf.mxu0  ;;  %v506_v14 = vpop.f32.mrf.mxu1 }
  0xf7   :  { %v1188_v15 = vpack.c.bf16 %v345_v11, %v343_v9  ;;  %v1220_v16 = vpack.c.bf16 %v505_v12, %v503_v10  ;;  %v347_v19 = vadd.f32 %v346_v13, %v1569_v46  ;;  %v507_v20 = vadd.f32 %v506_v14, %v1569_v46 }
  0xf8   :  { %v348_v17 = vpop.f32.mrf.mxu0  ;;  %v508_v18 = vpop.f32.mrf.mxu1 }
  0xf9   :  { %1016 = vst.msk [vmem:[%s2028_s3 + $0x40] sm:$0xff] %vm1577_vm3, %v1188_v15  ;;  %1048 = vst.msk [vmem:[%s2028_s3 + $0x140] sm:$0xff] %vm1577_vm3, %v1220_v16  ;;  %v349_v21 = vadd.f32 %v348_v17, %v1571_v47  ;;  %v509_v22 = vadd.f32 %v508_v18, %v1571_v47 }
  0xfa   :  { %v352_v23 = vpop.f32.mrf.mxu0  ;;  %v512_v24 = vpop.f32.mrf.mxu1 }
  0xfb   :  { %v1189_v25 = vpack.c.bf16 %v349_v21, %v347_v19  ;;  %v1221_v26 = vpack.c.bf16 %v509_v22, %v507_v20  ;;  %v353_v29 = vadd.f32 %v352_v23, %v1569_v46  ;;  %v513_v30 = vadd.f32 %v512_v24, %v1569_v46 }
  0xfc   :  { %v354_v27 = vpop.f32.mrf.mxu0  ;;  %v514_v28 = vpop.f32.mrf.mxu1 }
  0xfd   :  { %1017 = vst.msk [vmem:[%s2028_s3 + $0x48] sm:$0xff] %vm1577_vm3, %v1189_v25  ;;  %1049 = vst.msk [vmem:[%s2028_s3 + $0x148] sm:$0xff] %vm1577_vm3, %v1221_v26  ;;  %v355_v31 = vadd.f32 %v354_v27, %v1571_v47  ;;  %v515_v32 = vadd.f32 %v514_v28, %v1571_v47 }
  0xfe   :  { %v356_v33 = vpop.f32.mrf.mxu0  ;;  %v516_v34 = vpop.f32.mrf.mxu1 }
  0xff   :  { %v1190_v35 = vpack.c.bf16 %v355_v31, %v353_v29  ;;  %v1222_v36 = vpack.c.bf16 %v515_v32, %v513_v30  ;;  %v357_v39 = vadd.f32 %v356_v33, %v1569_v46  ;;  %v517_v40 = vadd.f32 %v516_v34, %v1569_v46 }
 0x100   :  { %v358_v37 = vpop.f32.mrf.mxu0  ;;  %v518_v38 = vpop.f32.mrf.mxu1 }
 0x101   :  { %1018 = vst.msk [vmem:[%s2028_s3 + $0x50] sm:$0xff] %vm1577_vm3, %v1190_v35  ;;  %1050 = vst.msk [vmem:[%s2028_s3 + $0x150] sm:$0xff] %vm1577_vm3, %v1222_v36  ;;  %v359_v41 = vadd.f32 %v358_v37, %v1571_v47  ;;  %v519_v42 = vadd.f32 %v518_v38, %v1571_v47 }
 0x102   :  { %v362_v1 = vpop.f32.mrf.mxu0  ;;  %v522_v43 = vpop.f32.mrf.mxu1 }
 0x103   :  { %v1191_v44 = vpack.c.bf16 %v359_v41, %v357_v39  ;;  %v1223_v45 = vpack.c.bf16 %v519_v42, %v517_v40  ;;  %v363_v50 = vadd.f32 %v362_v1, %v1569_v46  ;;  %v523_v51 = vadd.f32 %v522_v43, %v1569_v46 }
 0x104   :  { %v364_v48 = vpop.f32.mrf.mxu0  ;;  %v524_v49 = vpop.f32.mrf.mxu1 }
 0x105   :  { %1019 = vst.msk [vmem:[%s2028_s3 + $0x58] sm:$0xff] %vm1577_vm3, %v1191_v44  ;;  %1051 = vst.msk [vmem:[%s2028_s3 + $0x158] sm:$0xff] %vm1577_vm3, %v1223_v45  ;;  %v365_v52 = vadd.f32 %v364_v48, %v1571_v47  ;;  %v525_v53 = vadd.f32 %v524_v49, %v1571_v47 }
 0x106   :  { %v366_v54 = vpop.f32.mrf.mxu0  ;;  %v526_v55 = vpop.f32.mrf.mxu1 }
 0x107   :  { %v1192_v57 = vpack.c.bf16 %v365_v52, %v363_v50  ;;  %v1224_v58 = vpack.c.bf16 %v525_v53, %v523_v51  ;;  %v367_v61 = vadd.f32 %v366_v54, %v1569_v46  ;;  %v527_v62 = vadd.f32 %v526_v55, %v1569_v46 }
 0x108   :  { %v368_v59 = vpop.f32.mrf.mxu0  ;;  %v528_v60 = vpop.f32.mrf.mxu1 }
 0x109   :  { %1020 = vst.msk [vmem:[%s2028_s3 + $0x60] sm:$0xff] %vm1577_vm3, %v1192_v57  ;;  %1052 = vst.msk [vmem:[%s2028_s3 + $0x160] sm:$0xff] %vm1577_vm3, %v1224_v58  ;;  %v369_v63 = vadd.f32 %v368_v59, %v1571_v47  ;;  %v529_v0 = vadd.f32 %v528_v60, %v1571_v47 }
 0x10a   :  { %v372_v2 = vpop.f32.mrf.mxu0  ;;  %v532_v3 = vpop.f32.mrf.mxu1 }
 0x10b   :  { %v1193_v4 = vpack.c.bf16 %v369_v63, %v367_v61  ;;  %v1225_v5 = vpack.c.bf16 %v529_v0, %v527_v62  ;;  %v373_v8 = vadd.f32 %v372_v2, %v1569_v46  ;;  %v533_v9 = vadd.f32 %v532_v3, %v1569_v46 }
 0x10c   :  { %v374_v6 = vpop.f32.mrf.mxu0  ;;  %v534_v7 = vpop.f32.mrf.mxu1 }
 0x10d   :  { %1021 = vst.msk [vmem:[%s2028_s3 + $0x68] sm:$0xff] %vm1577_vm3, %v1193_v4  ;;  %1053 = vst.msk [vmem:[%s2028_s3 + $0x168] sm:$0xff] %vm1577_vm3, %v1225_v5  ;;  %v375_v10 = vadd.f32 %v374_v6, %v1571_v47  ;;  %v535_v11 = vadd.f32 %v534_v7, %v1571_v47 }
 0x10e   :  { %v376_v12 = vpop.f32.mrf.mxu0  ;;  %v536_v13 = vpop.f32.mrf.mxu1 }
 0x10f   :  { %v1194_v14 = vpack.c.bf16 %v375_v10, %v373_v8  ;;  %v1226_v15 = vpack.c.bf16 %v535_v11, %v533_v9  ;;  %v377_v18 = vadd.f32 %v376_v12, %v1569_v46  ;;  %v537_v19 = vadd.f32 %v536_v13, %v1569_v46 }
 0x110   :  { %v378_v16 = vpop.f32.mrf.mxu0  ;;  %v538_v17 = vpop.f32.mrf.mxu1 }
 0x111   :  { %1022 = vst.msk [vmem:[%s2028_s3 + $0x70] sm:$0xff] %vm1577_vm3, %v1194_v14  ;;  %1054 = vst.msk [vmem:[%s2028_s3 + $0x170] sm:$0xff] %vm1577_vm3, %v1226_v15  ;;  %v379_v20 = vadd.f32 %v378_v16, %v1571_v47  ;;  %v539_v21 = vadd.f32 %v538_v17, %v1571_v47 }
 0x112   :  { %v382_v22 = vpop.f32.mrf.mxu0  ;;  %v542_v23 = vpop.f32.mrf.mxu1 }
 0x113   :  { %v1195_v24 = vpack.c.bf16 %v379_v20, %v377_v18  ;;  %v1227_v25 = vpack.c.bf16 %v539_v21, %v537_v19  ;;  %v383_v28 = vadd.f32 %v382_v22, %v1569_v46  ;;  %v543_v29 = vadd.f32 %v542_v23, %v1569_v46 }
 0x114   :  { %v384_v26 = vpop.f32.mrf.mxu0  ;;  %v544_v27 = vpop.f32.mrf.mxu1 }
 0x115   :  { %1023 = vst.msk [vmem:[%s2028_s3 + $0x78] sm:$0xff] %vm1577_vm3, %v1195_v24  ;;  %1055 = vst.msk [vmem:[%s2028_s3 + $0x178] sm:$0xff] %vm1577_vm3, %v1227_v25  ;;  %v385_v30 = vadd.f32 %v384_v26, %v1571_v47  ;;  %v545_v31 = vadd.f32 %v544_v27, %v1571_v47 }
 0x116   :  { %v386_v32 = vpop.f32.mrf.mxu0  ;;  %v546_v33 = vpop.f32.mrf.mxu1 }
 0x117   :  { %v1196_v34 = vpack.c.bf16 %v385_v30, %v383_v28  ;;  %v1228_v35 = vpack.c.bf16 %v545_v31, %v543_v29  ;;  %v387_v38 = vadd.f32 %v386_v32, %v1569_v46  ;;  %v547_v39 = vadd.f32 %v546_v33, %v1569_v46 }
 0x118   :  { %v388_v36 = vpop.f32.mrf.mxu0  ;;  %v548_v37 = vpop.f32.mrf.mxu1 }
 0x119   :  { %1024 = vst.msk [vmem:[%s2028_s3 + $0x80] sm:$0xff] %vm1577_vm3, %v1196_v34  ;;  %1056 = vst.msk [vmem:[%s2028_s3 + $0x180] sm:$0xff] %vm1577_vm3, %v1228_v35  ;;  %v389_v40 = vadd.f32 %v388_v36, %v1571_v47  ;;  %v549_v41 = vadd.f32 %v548_v37, %v1571_v47 }
 0x11a   :  { %v392_v42 = vpop.f32.mrf.mxu0  ;;  %v552_v1 = vpop.f32.mrf.mxu1 }
 0x11b   :  { %v1197_v43 = vpack.c.bf16 %v389_v40, %v387_v38  ;;  %v1229_v44 = vpack.c.bf16 %v549_v41, %v547_v39  ;;  %v393_v49 = vadd.f32 %v392_v42, %v1569_v46  ;;  %v553_v50 = vadd.f32 %v552_v1, %v1569_v46 }
 0x11c   :  { %v394_v45 = vpop.f32.mrf.mxu0  ;;  %v554_v48 = vpop.f32.mrf.mxu1 }
 0x11d   :  { %1025 = vst.msk [vmem:[%s2028_s3 + $0x88] sm:$0xff] %vm1577_vm3, %v1197_v43  ;;  %1057 = vst.msk [vmem:[%s2028_s3 + $0x188] sm:$0xff] %vm1577_vm3, %v1229_v44  ;;  %v395_v51 = vadd.f32 %v394_v45, %v1571_v47  ;;  %v555_v52 = vadd.f32 %v554_v48, %v1571_v47 }
 0x11e   :  { %v396_v53 = vpop.f32.mrf.mxu0  ;;  %v556_v54 = vpop.f32.mrf.mxu1 }
 0x11f   :  { %v1198_v55 = vpack.c.bf16 %v395_v51, %v393_v49  ;;  %v1230_v57 = vpack.c.bf16 %v555_v52, %v553_v50  ;;  %v397_v60 = vadd.f32 %v396_v53, %v1569_v46  ;;  %v557_v61 = vadd.f32 %v556_v54, %v1569_v46 }
 0x120   :  { %v398_v58 = vpop.f32.mrf.mxu0  ;;  %v558_v59 = vpop.f32.mrf.mxu1 }
 0x121   :  { %1026 = vst.msk [vmem:[%s2028_s3 + $0x90] sm:$0xff] %vm1577_vm3, %v1198_v55  ;;  %1058 = vst.msk [vmem:[%s2028_s3 + $0x190] sm:$0xff] %vm1577_vm3, %v1230_v57  ;;  %v399_v62 = vadd.f32 %v398_v58, %v1571_v47  ;;  %v559_v63 = vadd.f32 %v558_v59, %v1571_v47 }
 0x122   :  { %v402_v0 = vpop.f32.mrf.mxu0  ;;  %v562_v2 = vpop.f32.mrf.mxu1 }
 0x123   :  { %v1199_v3 = vpack.c.bf16 %v399_v62, %v397_v60  ;;  %v1231_v4 = vpack.c.bf16 %v559_v63, %v557_v61  ;;  %v403_v7 = vadd.f32 %v402_v0, %v1569_v46  ;;  %v563_v8 = vadd.f32 %v562_v2, %v1569_v46 }
 0x124   :  { %v404_v5 = vpop.f32.mrf.mxu0  ;;  %v564_v6 = vpop.f32.mrf.mxu1 }
 0x125   :  { %1027 = vst.msk [vmem:[%s2028_s3 + $0x98] sm:$0xff] %vm1577_vm3, %v1199_v3  ;;  %1059 = vst.msk [vmem:[%s2028_s3 + $0x198] sm:$0xff] %vm1577_vm3, %v1231_v4  ;;  %v405_v9 = vadd.f32 %v404_v5, %v1571_v47  ;;  %v565_v10 = vadd.f32 %v564_v6, %v1571_v47 }
 0x126   :  { %v406_v11 = vpop.f32.mrf.mxu0  ;;  %v566_v12 = vpop.f32.mrf.mxu1 }
 0x127   :  { %v1200_v13 = vpack.c.bf16 %v405_v9, %v403_v7  ;;  %v1232_v14 = vpack.c.bf16 %v565_v10, %v563_v8  ;;  %v407_v17 = vadd.f32 %v406_v11, %v1569_v46  ;;  %v567_v18 = vadd.f32 %v566_v12, %v1569_v46 }
 0x128   :  { %v408_v15 = vpop.f32.mrf.mxu0  ;;  %v568_v16 = vpop.f32.mrf.mxu1 }
 0x129   :  { %1028 = vst.msk [vmem:[%s2028_s3 + $0xa0] sm:$0xff] %vm1577_vm3, %v1200_v13  ;;  %1060 = vst.msk [vmem:[%s2028_s3 + $0x1a0] sm:$0xff] %vm1577_vm3, %v1232_v14  ;;  %v409_v19 = vadd.f32 %v408_v15, %v1571_v47  ;;  %v569_v20 = vadd.f32 %v568_v16, %v1571_v47 }
 0x12a   :  { %v412_v21 = vpop.f32.mrf.mxu0  ;;  %v572_v22 = vpop.f32.mrf.mxu1 }
 0x12b   :  { %v1201_v23 = vpack.c.bf16 %v409_v19, %v407_v17  ;;  %v1233_v24 = vpack.c.bf16 %v569_v20, %v567_v18  ;;  %v413_v27 = vadd.f32 %v412_v21, %v1569_v46  ;;  %v573_v28 = vadd.f32 %v572_v22, %v1569_v46 }
 0x12c   :  { %v414_v25 = vpop.f32.mrf.mxu0  ;;  %v574_v26 = vpop.f32.mrf.mxu1 }
 0x12d   :  { %1029 = vst.msk [vmem:[%s2028_s3 + $0xa8] sm:$0xff] %vm1577_vm3, %v1201_v23  ;;  %1061 = vst.msk [vmem:[%s2028_s3 + $0x1a8] sm:$0xff] %vm1577_vm3, %v1233_v24  ;;  %v415_v29 = vadd.f32 %v414_v25, %v1571_v47  ;;  %v575_v30 = vadd.f32 %v574_v26, %v1571_v47 }
 0x12e   :  { %v416_v31 = vpop.f32.mrf.mxu0  ;;  %v576_v32 = vpop.f32.mrf.mxu1 }
 0x12f   :  { %v1202_v33 = vpack.c.bf16 %v415_v29, %v413_v27  ;;  %v1234_v34 = vpack.c.bf16 %v575_v30, %v573_v28  ;;  %v417_v37 = vadd.f32 %v416_v31, %v1569_v46  ;;  %v577_v38 = vadd.f32 %v576_v32, %v1569_v46 }
 0x130   :  { %v418_v35 = vpop.f32.mrf.mxu0  ;;  %v578_v36 = vpop.f32.mrf.mxu1 }
 0x131   :  { %1030 = vst.msk [vmem:[%s2028_s3 + $0xb0] sm:$0xff] %vm1577_vm3, %v1202_v33  ;;  %1062 = vst.msk [vmem:[%s2028_s3 + $0x1b0] sm:$0xff] %vm1577_vm3, %v1234_v34  ;;  %v419_v39 = vadd.f32 %v418_v35, %v1571_v47  ;;  %v579_v40 = vadd.f32 %v578_v36, %v1571_v47 }
 0x132   :  { %v422_v41 = vpop.f32.mrf.mxu0  ;;  %v582_v42 = vpop.f32.mrf.mxu1 }
 0x133   :  { %v1203_v1 = vpack.c.bf16 %v419_v39, %v417_v37  ;;  %v1235_v43 = vpack.c.bf16 %v579_v40, %v577_v38  ;;  %v423_v48 = vadd.f32 %v422_v41, %v1569_v46  ;;  %v583_v49 = vadd.f32 %v582_v42, %v1569_v46 }
 0x134   :  { %v424_v44 = vpop.f32.mrf.mxu0  ;;  %v584_v45 = vpop.f32.mrf.mxu1 }
 0x135   :  { %1031 = vst.msk [vmem:[%s2028_s3 + $0xb8] sm:$0xff] %vm1577_vm3, %v1203_v1  ;;  %1063 = vst.msk [vmem:[%s2028_s3 + $0x1b8] sm:$0xff] %vm1577_vm3, %v1235_v43  ;;  %v425_v50 = vadd.f32 %v424_v44, %v1571_v47  ;;  %v585_v51 = vadd.f32 %v584_v45, %v1571_v47 }
 0x136   :  { %v426_v52 = vpop.f32.mrf.mxu0  ;;  %v586_v53 = vpop.f32.mrf.mxu1 }
 0x137   :  { %v1204_v54 = vpack.c.bf16 %v425_v50, %v423_v48  ;;  %v1236_v55 = vpack.c.bf16 %v585_v51, %v583_v49  ;;  %v427_v59 = vadd.f32 %v426_v52, %v1569_v46  ;;  %v587_v60 = vadd.f32 %v586_v53, %v1569_v46 }
 0x138   :  { %v428_v57 = vpop.f32.mrf.mxu0  ;;  %v588_v58 = vpop.f32.mrf.mxu1 }
 0x139   :  { %1032 = vst.msk [vmem:[%s2028_s3 + $0xc0] sm:$0xff] %vm1577_vm3, %v1204_v54  ;;  %1064 = vst.msk [vmem:[%s2028_s3 + $0x1c0] sm:$0xff] %vm1577_vm3, %v1236_v55  ;;  %v429_v61 = vadd.f32 %v428_v57, %v1571_v47  ;;  %v589_v62 = vadd.f32 %v588_v58, %v1571_v47 }
 0x13a   :  { %v432_v63 = vpop.f32.mrf.mxu0  ;;  %v592_v0 = vpop.f32.mrf.mxu1 }
 0x13b   :  { %v1205_v2 = vpack.c.bf16 %v429_v61, %v427_v59  ;;  %v1237_v3 = vpack.c.bf16 %v589_v62, %v587_v60  ;;  %v433_v6 = vadd.f32 %v432_v63, %v1569_v46  ;;  %v593_v7 = vadd.f32 %v592_v0, %v1569_v46 }
 0x13c   :  { %v434_v4 = vpop.f32.mrf.mxu0  ;;  %v594_v5 = vpop.f32.mrf.mxu1 }
 0x13d   :  { %1033 = vst.msk [vmem:[%s2028_s3 + $0xc8] sm:$0xff] %vm1577_vm3, %v1205_v2  ;;  %1065 = vst.msk [vmem:[%s2028_s3 + $0x1c8] sm:$0xff] %vm1577_vm3, %v1237_v3  ;;  %v435_v8 = vadd.f32 %v434_v4, %v1571_v47  ;;  %v595_v9 = vadd.f32 %v594_v5, %v1571_v47 }
 0x13e   :  { %v436_v10 = vpop.f32.mrf.mxu0  ;;  %v596_v11 = vpop.f32.mrf.mxu1 }
 0x13f   :  { %v1206_v12 = vpack.c.bf16 %v435_v8, %v433_v6  ;;  %v1238_v13 = vpack.c.bf16 %v595_v9, %v593_v7  ;;  %v437_v16 = vadd.f32 %v436_v10, %v1569_v46  ;;  %v597_v17 = vadd.f32 %v596_v11, %v1569_v46 }
 0x140   :  { %v438_v14 = vpop.f32.mrf.mxu0  ;;  %v598_v15 = vpop.f32.mrf.mxu1 }
 0x141   :  { %1034 = vst.msk [vmem:[%s2028_s3 + $0xd0] sm:$0xff] %vm1577_vm3, %v1206_v12  ;;  %1066 = vst.msk [vmem:[%s2028_s3 + $0x1d0] sm:$0xff] %vm1577_vm3, %v1238_v13  ;;  %v439_v18 = vadd.f32 %v438_v14, %v1571_v47  ;;  %v599_v19 = vadd.f32 %v598_v15, %v1571_v47 }
 0x142   :  { %v442_v20 = vpop.f32.mrf.mxu0  ;;  %v602_v21 = vpop.f32.mrf.mxu1 }
 0x143   :  { %v1207_v22 = vpack.c.bf16 %v439_v18, %v437_v16  ;;  %v1239_v23 = vpack.c.bf16 %v599_v19, %v597_v17  ;;  %v443_v26 = vadd.f32 %v442_v20, %v1569_v46  ;;  %v603_v27 = vadd.f32 %v602_v21, %v1569_v46 }
 0x144   :  { %v444_v24 = vpop.f32.mrf.mxu0  ;;  %v604_v25 = vpop.f32.mrf.mxu1 }
 0x145   :  { %1035 = vst.msk [vmem:[%s2028_s3 + $0xd8] sm:$0xff] %vm1577_vm3, %v1207_v22  ;;  %1067 = vst.msk [vmem:[%s2028_s3 + $0x1d8] sm:$0xff] %vm1577_vm3, %v1239_v23  ;;  %v445_v28 = vadd.f32 %v444_v24, %v1571_v47  ;;  %v605_v29 = vadd.f32 %v604_v25, %v1571_v47 }
 0x146   :  { %v446_v30 = vpop.f32.mrf.mxu0  ;;  %v606_v31 = vpop.f32.mrf.mxu1 }
 0x147   :  { %v1208_v32 = vpack.c.bf16 %v445_v28, %v443_v26  ;;  %v1240_v33 = vpack.c.bf16 %v605_v29, %v603_v27  ;;  %v447_v36 = vadd.f32 %v446_v30, %v1569_v46  ;;  %v607_v37 = vadd.f32 %v606_v31, %v1569_v46 }
 0x148   :  { %v448_v34 = vpop.f32.mrf.mxu0  ;;  %v608_v35 = vpop.f32.mrf.mxu1 }
 0x149   :  { %1036 = vst.msk [vmem:[%s2028_s3 + $0xe0] sm:$0xff] %vm1577_vm3, %v1208_v32  ;;  %1068 = vst.msk [vmem:[%s2028_s3 + $0x1e0] sm:$0xff] %vm1577_vm3, %v1240_v33  ;;  %v449_v38 = vadd.f32 %v448_v34, %v1571_v47  ;;  %v609_v39 = vadd.f32 %v608_v35, %v1571_v47 }
 0x14a   :  { %v452_v40 = vpop.f32.mrf.mxu0  ;;  %v612_v41 = vpop.f32.mrf.mxu1 }
 0x14b   :  { %v1209_v42 = vpack.c.bf16 %v449_v38, %v447_v36  ;;  %v1241_v1 = vpack.c.bf16 %v609_v39, %v607_v37  ;;  %v453_v45 = vadd.f32 %v452_v40, %v1569_v46  ;;  %v613_v48 = vadd.f32 %v612_v41, %v1569_v46 }
 0x14c   :  { %v454_v43 = vpop.f32.mrf.mxu0  ;;  %v614_v44 = vpop.f32.mrf.mxu1 }
 0x14d   :  { %1037 = vst.msk [vmem:[%s2028_s3 + $0xe8] sm:$0xff] %vm1577_vm3, %v1209_v42  ;;  %1069 = vst.msk [vmem:[%s2028_s3 + $0x1e8] sm:$0xff] %vm1577_vm3, %v1241_v1  ;;  %v455_v49 = vadd.f32 %v454_v43, %v1571_v47  ;;  %v615_v50 = vadd.f32 %v614_v44, %v1571_v47 }
 0x14e   :  { %v456_v51 = vpop.f32.mrf.mxu0  ;;  %v616_v52 = vpop.f32.mrf.mxu1 }
 0x14f   :  { %v1210_v53 = vpack.c.bf16 %v455_v49, %v453_v45  ;;  %v1242_v54 = vpack.c.bf16 %v615_v50, %v613_v48  ;;  %v457_v58 = vadd.f32 %v456_v51, %v1569_v46  ;;  %v617_v59 = vadd.f32 %v616_v52, %v1569_v46 }
 0x150   :  { %v458_v55 = vpop.f32.mrf.mxu0  ;;  %v618_v57 = vpop.f32.mrf.mxu1 }
 0x151   :  { %1038 = vst.msk [vmem:[%s2028_s3 + $0xf0] sm:$0xff] %vm1577_vm3, %v1210_v53  ;;  %1070 = vst.msk [vmem:[%s2028_s3 + $0x1f0] sm:$0xff] %vm1577_vm3, %v1242_v54  ;;  %v459_v60 = vadd.f32 %v458_v55, %v1571_v47  ;;  %v619_v61 = vadd.f32 %v618_v57, %v1571_v47 }
 0x153   :  { %v1211_v62 = vpack.c.bf16 %v459_v60, %v457_v58  ;;  %v1243_v63 = vpack.c.bf16 %v619_v61, %v617_v59 }
 0x155   :  { %1039 = vst.msk [vmem:[%s2028_s3 + $0xf8] sm:$0xff] %vm1577_vm3, %v1211_v62  ;;  %1071 = vst.msk [vmem:[%s2028_s3 + $0x1f8] sm:$0xff] %vm1577_vm3, %v1243_v63 }

</bundles_post_ra>
